<compile_context>
chip_gen: v6e
topology: v6e:2x2x1
jax: 0.10.0
libtpu: 0.0.40
codegen_flags: <defaults>
</compile_context>

<pallas_src>
import functools

import jax
import jax.numpy as jnp
from jax import lax
from jax.experimental import pallas as pl
from jax.experimental.pallas import tpu as pltpu

# ---- loss hyper-parameters (from the module __init__) -----------------------
S = 7
B = 2
C = 20
LAMBDA_COORD = 5.0
LAMBDA_NOOBJ = 0.5
FEAT = 5 * B + C          # 30

TM_MAX = 2048             # max rows (grid cells) per block; multiple of 32


def _yolo_loss_kernel(p_ref, t_ref, out_ref, *, cells, mask_tail):
    """One (tm, FEAT) tile of cells.

    out_ref is a per-parallel-chunk (8, FEAT) accumulator block; its block
    index depends only on the parallel axis, so it stays resident in VMEM
    across the 'arbitrary' reduction axis and is written to HBM once per
    chunk (~1 KiB).
    """
    k = pl.program_id(1)

    @pl.when(k == 0)
    def _():
        out_ref[...] = jnp.zeros_like(out_ref)

    p = p_ref[...].astype(jnp.float32)          # (tm, d)
    t = t_ref[...].astype(jnp.float32)
    tm, d = p.shape

    # object / no-object cell masks from target confidence (column 4).
    # Kept separate (noobj is conf == 0, NOT 1 - obj) to match the module.
    conf_t = t[:, 4:5]                           # (tm, 1)
    obj = (conf_t > 0).astype(jnp.float32)
    noobj = (conf_t == 0).astype(jnp.float32)

    # Static per-column weight templates, built on a single (1, d) vreg.
    col = lax.broadcasted_iota(jnp.int32, (1, d), 1)
    w_obj = jnp.where(col < 2, LAMBDA_COORD,     # x, y
                      jnp.where(col >= 4, 1.0,   # confidence + all class cols
                                0.0))            # w/h handled by wh term below
    w_noobj = jnp.where(col == 4, LAMBDA_NOOBJ, 0.0)
    is_wh = (col >= 2) & (col < 4)               # (1, d) static column mask

    weight = obj * w_obj + noobj * w_noobj       # (tm, d)

    diff = p - t
    base_term = weight * (diff * diff)           # (tm, d)

    # w/h sqrt-space squared error; computing it full-width costs the same
    # number of vregs as a 2-column slice (lanes < 128 either way) and avoids
    # narrow slices + a second accumulate.  Only columns 2:4 are selected.
    wh_d = jnp.sqrt(jnp.abs(p + 1e-6)) - jnp.sqrt(jnp.abs(t + 1e-6))
    wh_term = (LAMBDA_COORD * obj) * (wh_d * wh_d)

    contrib = jnp.where(is_wh, wh_term, base_term)

    if mask_tail:
        # Zero rows past the logical end with a SELECT (NaN-safe), using the
        # unclamped global block index so fully out-of-range blocks vanish.
        base_row = (pl.program_id(0) * pl.num_programs(1) + k) * tm
        rows = lax.broadcasted_iota(jnp.int32, (tm, 1), 0)
        valid = (rows + base_row) < cells
        contrib = jnp.where(valid, contrib, 0.0)

    # In-kernel reduction over the row (sublane) axis; accumulate into the
    # VMEM-resident output block (row 0 of the (8, d) chunk accumulator).
    out_ref[0:1, :] += jnp.sum(contrib, axis=0, keepdims=True)


def yolo_loss(pred, target):
    """pred, target: (N, S, S, 5*B + C) arrays. Returns scalar f32 loss."""
    n, s1, s2, d = pred.shape
    assert target.shape == pred.shape
    cells = n * s1 * s2

    # free, contiguous reshapes -- no padding, no transpose, no dtype cast
    p2 = pred.reshape(cells, d)
    t2 = target.reshape(cells, d)

    # Tile sizing: a single full-array block for small batches (block ==
    # full array dims, so no (8,128) divisibility issue), otherwise TM_MAX
    # rows per block with a 2-way parallel chunk split.
    if cells <= TM_MAX:
        tm, nblocks = cells, 1
    else:
        tm = TM_MAX
        nblocks = pl.cdiv(cells, tm)
    n_par = 2 if nblocks >= 2 else 1
    n_arb = pl.cdiv(nblocks, n_par)
    mask_tail = (n_par * n_arb * tm) != cells

    def in_map(pi, ki):
        # Clamp so an overshooting block (odd nblocks split 2 ways) re-reads
        # the last real block; its contribution is zeroed in-kernel.
        return (jnp.minimum(pi * n_arb + ki, nblocks - 1), 0)

    kernel = functools.partial(_yolo_loss_kernel, cells=cells,
                               mask_tail=mask_tail)

    itemsize = jnp.dtype(pred.dtype).itemsize
    cost = pl.CostEstimate(
        flops=18 * cells * d,
        transcendentals=2 * cells * d,
        bytes_accessed=2 * cells * d * itemsize + n_par * 8 * d * 4,
    )

    out = pl.pallas_call(
        kernel,
        out_shape=jax.ShapeDtypeStruct((n_par * 8, d), jnp.float32),
        grid_spec=pltpu.PrefetchScalarGridSpec(
            num_scalar_prefetch=0,
            grid=(n_par, n_arb),
            in_specs=[
                pl.BlockSpec((tm, d), in_map),      # pred
                pl.BlockSpec((tm, d), in_map),      # target
            ],
            out_specs=pl.BlockSpec((8, d), lambda pi, ki: (pi, 0)),
        ),
        compiler_params=pltpu.CompilerParams(
            dimension_semantics=("parallel", "arbitrary"),
        ),
        cost_estimate=cost,
    )(p2, t2)

    # Tiny epilogue: sum the (n_par*8, d) per-chunk partials to a scalar.
    return jnp.sum(out)


def yolo_loss_ref(pred, target):
    """Pure-JAX reference mirroring the PyTorch boolean-index semantics."""
    pred = pred.astype(jnp.float32)
    target = target.astype(jnp.float32)
    obj = (target[..., 4] > 0).astype(jnp.float32)[..., None]
    noobj = (target[..., 4] == 0).astype(jnp.float32)[..., None]

    xy_loss = jnp.sum(obj * (pred[..., 0:2] - target[..., 0:2]) ** 2)
    wh_loss = jnp.sum(
        obj
        * (
            jnp.sqrt(jnp.abs(pred[..., 2:4] + 1e-6))
            - jnp.sqrt(jnp.abs(target[..., 2:4] + 1e-6))
        )
        ** 2
    )
    loc_loss = xy_loss + wh_loss
    conf_obj = jnp.sum(obj[..., 0] * (pred[..., 4] - target[..., 4]) ** 2)
    conf_noobj = jnp.sum(noobj[..., 0] * (pred[..., 4] - target[..., 4]) ** 2)
    class_loss = jnp.sum(obj * (pred[..., 5:] - target[..., 5:]) ** 2)
    return (
        LAMBDA_COORD * loc_loss
        + conf_obj
        + LAMBDA_NOOBJ * conf_noobj
        + class_loss
    )


def _make_inputs(key, n):
    k1, k2, k3 = jax.random.split(key, 3)
    pred = jax.random.uniform(k1, (n, S, S, FEAT), dtype=jnp.float32)
    target = jax.random.uniform(k2, (n, S, S, FEAT), dtype=jnp.float32)
    # Deterministic mix of object / no-object cells (confidence is 1 or 0).
    conf = (jax.random.uniform(k3, (n, S, S)) > 0.5).astype(jnp.float32)
    target = target.at[..., 4].set(conf)
    return pred, target


if __name__ == "__main__":
    key = jax.random.PRNGKey(0)

    # Small case: single full-array block, no tail masking.
    pred, target = _make_inputs(key, 2)
    out = jax.block_until_ready(yolo_loss(pred, target))
    ref = jax.block_until_ready(yolo_loss_ref(pred, target))
    assert jnp.allclose(out, ref, rtol=1e-4, atol=1e-2), (out, ref)

    # Multi-block case: 2-way parallel split + in-kernel ragged-tail masking.
    pred2, target2 = _make_inputs(jax.random.PRNGKey(1), 64)   # 3136 cells
    out2 = jax.block_until_ready(yolo_loss(pred2, target2))
    ref2 = jax.block_until_ready(yolo_loss_ref(pred2, target2))
    assert jnp.allclose(out2, ref2, rtol=1e-4, atol=1e-2), (out2, ref2)

    print("KERNEL_OK")
</pallas_src>

<mosaic_0001>
module attributes {stable_mosaic.version = 11 : i64} {
  func.func @_yolo_loss_kernel(%arg0: i32, %arg1: i32, %arg2: memref<98x30xf32, #tpu.memory_space<vmem>>, %arg3: memref<98x30xf32, #tpu.memory_space<vmem>>, %arg4: memref<8x30xf32, #tpu.memory_space<vmem>>) attributes {dimension_semantics = [#tpu.dimension_semantics<parallel>, #tpu.dimension_semantics<arbitrary>], iteration_bounds = array<i64: 1, 1>, scalar_prefetch = 0 : i64, scratch_operands = 0 : i64, tpu.core_type = #tpu.core_type<tc>, window_params = [{transform_indices = @transform_0, window_bounds = array<i64: 98, 30>}, {transform_indices = @transform_1, window_bounds = array<i64: 98, 30>}, {transform_indices = @transform_2, window_bounds = array<i64: 8, 30>}]} {
    %c0_i32 = arith.constant 0 : i32
    %0 = arith.cmpi eq, %arg1, %c0_i32 : i32
    %1 = arith.extui %0 : i1 to i32
    %c0_i32_0 = arith.constant 0 : i32
    %2 = arith.cmpi ne, %1, %c0_i32_0 : i32
    scf.if %2 {
      %cst_21 = arith.constant 0.000000e+00 : f32
      %66 = vector.broadcast %cst_21 : f32 to vector<8x30xf32>
      %c0_22 = arith.constant 0 : index
      %c0_23 = arith.constant 0 : index
      %67 = vector.load %arg4[%c0_22, %c0_23] : memref<8x30xf32, #tpu.memory_space<vmem>>, vector<8x30xf32>
      tpu.vector_store %arg4[%c0_22, %c0_23], %66 {strides = array<i32>} : memref<8x30xf32, #tpu.memory_space<vmem>>, vector<8x30xf32>,
    } else {
    }
    %c0 = arith.constant 0 : index
    %c0_1 = arith.constant 0 : index
    %3 = vector.load %arg2[%c0, %c0_1] : memref<98x30xf32, #tpu.memory_space<vmem>>, vector<98x30xf32>
    %c0_2 = arith.constant 0 : index
    %c0_3 = arith.constant 0 : index
    %4 = vector.load %arg3[%c0_2, %c0_3] : memref<98x30xf32, #tpu.memory_space<vmem>>, vector<98x30xf32>
    %5 = vector.extract_strided_slice %4 {offsets = [0, 4], sizes = [98, 1], strides = [1, 1]} : vector<98x30xf32> to vector<98x1xf32>
    %cst = arith.constant 0.000000e+00 : f32
    %6 = vector.broadcast %cst : f32 to vector<98x1xf32>
    %7 = arith.cmpf ogt, %5, %6 : vector<98x1xf32>
    %8 = arith.extui %7 : vector<98x1xi1> to vector<98x1xi32>
    %9 = arith.sitofp %8 : vector<98x1xi32> to vector<98x1xf32>
    %cst_4 = arith.constant 0.000000e+00 : f32
    %10 = vector.broadcast %cst_4 : f32 to vector<98x1xf32>
    %11 = arith.cmpf oeq, %5, %10 : vector<98x1xf32>
    %12 = arith.extui %11 : vector<98x1xi1> to vector<98x1xi32>
    %13 = arith.sitofp %12 : vector<98x1xi32> to vector<98x1xf32>
    %14 = tpu.iota {dimensions = array<i32: 1>} : vector<1x30xi32>
    %c2_i32 = arith.constant 2 : i32
    %15 = vector.broadcast %c2_i32 : i32 to vector<1x30xi32>
    %16 = arith.cmpi slt, %14, %15 : vector<1x30xi32>
    %c4_i32 = arith.constant 4 : i32
    %17 = vector.broadcast %c4_i32 : i32 to vector<1x30xi32>
    %18 = arith.cmpi sge, %14, %17 : vector<1x30xi32>
    %cst_5 = arith.constant 1.000000e+00 : f32
    %cst_6 = arith.constant 0.000000e+00 : f32
    %19 = vector.broadcast %cst_5 : f32 to vector<1x30xf32>
    %20 = vector.broadcast %cst_6 : f32 to vector<1x30xf32>
    %21 = arith.select %18, %19, %20 : vector<1x30xi1>, vector<1x30xf32>
    %cst_7 = arith.constant 5.000000e+00 : f32
    %22 = vector.broadcast %cst_7 : f32 to vector<1x30xf32>
    %23 = arith.select %16, %22, %21 : vector<1x30xi1>, vector<1x30xf32>
    %c4_i32_8 = arith.constant 4 : i32
    %24 = vector.broadcast %c4_i32_8 : i32 to vector<1x30xi32>
    %25 = arith.cmpi eq, %14, %24 : vector<1x30xi32>
    %cst_9 = arith.constant 5.000000e-01 : f32
    %cst_10 = arith.constant 0.000000e+00 : f32
    %26 = vector.broadcast %cst_9 : f32 to vector<1x30xf32>
    %27 = vector.broadcast %cst_10 : f32 to vector<1x30xf32>
    %28 = arith.select %25, %26, %27 : vector<1x30xi1>, vector<1x30xf32>
    %c2_i32_11 = arith.constant 2 : i32
    %29 = vector.broadcast %c2_i32_11 : i32 to vector<1x30xi32>
    %30 = arith.cmpi sge, %14, %29 : vector<1x30xi32>
    %c4_i32_12 = arith.constant 4 : i32
    %31 = vector.broadcast %c4_i32_12 : i32 to vector<1x30xi32>
    %32 = arith.cmpi slt, %14, %31 : vector<1x30xi32>
    %33 = arith.andi %30, %32 : vector<1x30xi1>
    %34 = vector.broadcast %9 : vector<98x1xf32> to vector<98x30xf32>
    %35 = vector.broadcast %23 : vector<1x30xf32> to vector<98x30xf32>
    %36 = arith.mulf %34, %35 : vector<98x30xf32>
    %37 = vector.broadcast %13 : vector<98x1xf32> to vector<98x30xf32>
    %38 = vector.broadcast %28 : vector<1x30xf32> to vector<98x30xf32>
    %39 = arith.mulf %37, %38 : vector<98x30xf32>
    %40 = arith.addf %36, %39 : vector<98x30xf32>
    %41 = arith.subf %3, %4 : vector<98x30xf32>
    %42 = arith.mulf %41, %41 : vector<98x30xf32>
    %43 = arith.mulf %40, %42 : vector<98x30xf32>
    %cst_13 = arith.constant 9.99999997E-7 : f32
    %44 = vector.broadcast %cst_13 : f32 to vector<98x30xf32>
    %45 = arith.addf %3, %44 : vector<98x30xf32>
    %46 = math.absf %45 : vector<98x30xf32>
    %47 = math.sqrt %46 : vector<98x30xf32>
    %cst_14 = arith.constant 9.99999997E-7 : f32
    %48 = vector.broadcast %cst_14 : f32 to vector<98x30xf32>
    %49 = arith.addf %4, %48 : vector<98x30xf32>
    %50 = math.absf %49 : vector<98x30xf32>
    %51 = math.sqrt %50 : vector<98x30xf32>
    %52 = arith.subf %47, %51 : vector<98x30xf32>
    %cst_15 = arith.constant 5.000000e+00 : f32
    %53 = vector.broadcast %cst_15 : f32 to vector<98x1xf32>
    %54 = arith.mulf %53, %9 : vector<98x1xf32>
    %55 = arith.mulf %52, %52 : vector<98x30xf32>
    %56 = vector.broadcast %54 : vector<98x1xf32> to vector<98x30xf32>
    %57 = arith.mulf %56, %55 : vector<98x30xf32>
    %58 = vector.shape_cast %33 : vector<1x30xi1> to vector<1x30xi1>
    %59 = vector.broadcast %58 : vector<1x30xi1> to vector<98x30xi1>
    %60 = arith.select %59, %57, %43 : vector<98x30xi1>, vector<98x30xf32>
    %c0_16 = arith.constant 0 : index
    %c0_17 = arith.constant 0 : index
    %61 = vector.load %arg4[%c0_16, %c0_17] : memref<8x30xf32, #tpu.memory_space<vmem>>, vector<1x30xf32>
    %cst_18 = arith.constant dense<0.000000e+00> : vector<30xf32>
    %62 = vector.multi_reduction <add>, %60, %cst_18 [0] : vector<98x30xf32> to vector<30xf32>
    %63 = vector.shape_cast %62 : vector<30xf32> to vector<1x30xf32>
    %64 = arith.addf %61, %63 : vector<1x30xf32>
    %c0_19 = arith.constant 0 : index
    %c0_20 = arith.constant 0 : index
    %65 = vector.load %arg4[%c0_19, %c0_20] : memref<8x30xf32, #tpu.memory_space<vmem>>, vector<1x30xf32>
    tpu.vector_store %arg4[%c0_19, %c0_20], %64 {strides = array<i32>} : memref<8x30xf32, #tpu.memory_space<vmem>>, vector<1x30xf32>,
    return
  }
  func.func @transform_0(%arg0: i32, %arg1: i32) -> (i32, i32) {
    %c1_i32 = arith.constant 1 : i32
    %0 = arith.muli %arg0, %c1_i32 : i32
    %1 = arith.addi %0, %arg1 : i32
    %c0_i32 = arith.constant 0 : i32
    %2 = arith.minsi %1, %c0_i32 : i32
    %c0_i32_0 = arith.constant 0 : i32
    %c0_i32_1 = arith.constant 0 : i32
    return %2, %c0_i32_0 : i32, i32
  }
  func.func @transform_1(%arg0: i32, %arg1: i32) -> (i32, i32) {
    %c1_i32 = arith.constant 1 : i32
    %0 = arith.muli %arg0, %c1_i32 : i32
    %1 = arith.addi %0, %arg1 : i32
    %c0_i32 = arith.constant 0 : i32
    %2 = arith.minsi %1, %c0_i32 : i32
    %c0_i32_0 = arith.constant 0 : i32
    %c0_i32_1 = arith.constant 0 : i32
    return %2, %c0_i32_0 : i32, i32
  }
  func.func @transform_2(%arg0: i32, %arg1: i32) -> (i32, i32) {
    %c0_i32 = arith.constant 0 : i32
    %c0_i32_0 = arith.constant 0 : i32
    return %arg0, %c0_i32 : i32, i32
  }
}

</mosaic_0001>

<bundles_post_ra>
// kernel: tpu_custom_call.1
= control target key start
LH: loop header
LB: loop body
LE: loop exit
PB: predicated region body
PF: predicated region fallthrough
CT: control target
= control target key end

     0   :  { %v1004_v3 = vmov 4   ;;  %v1005_v4 = vmov 0.0   ;;  %s1768_s0 = inlined_call_operand.vmem [shape: f32[98,30], index: 0, kind: input, shape index: {}]   ;;  %s1769_s1 = inlined_call_operand.vmem [shape: f32[98,30], index: 1, kind: input, shape index: {}]   ;;  %s1770_s2 = inlined_call_operand.hbm [shape: f32[8,30], index: 2, kind: output, shape index: {}]  }
   0x1   :  { %v1025_v0 = vld [vmem:[%s1769_s1 + $0x20] sm:$0xff]  ;;  %v1030_v1 = vld [vmem:[%s1769_s1 + $0x28] sm:$0xff]  ;;  %874 = vset.pattern.permute.xlu1 %v1004_v3  ;;  %863 = vset.pattern.permute.xlu0 %v1004_v3  ;;  %v1056_v9 = vld [vmem:[%s1769_s1 + $0x30] sm:$0xff] }
   0x2   :  { %v1035_v2 = vld [vmem:[%s1769_s1] sm:$0xff]  ;;  %vm112_vm0 = vcmp.gt.f32.partialorder %v1025_v0, 0.0  ;;  %vm113_vm1 = vcmp.gt.f32.partialorder %v1030_v1, 0.0  ;;  %v1048_v7 = vld [vmem:[%s1769_s1 + $0x8] sm:$0xff]  ;;  %v1063_v11 = vld [vmem:[%s1769_s1 + $0x38] sm:$0xff]  ;;  %vm114_vm4 = vcmp.gt.f32.partialorder %v1056_v9, 0.0 }
   0x3   :  { %v1040_v5 = vsel %vm112_vm0, 1.0, %v1005_v4  ;;  %v1043_v6 = vsel %vm113_vm1, 1.0, %v1005_v4  ;;  %vm108_vm2 = vcmp.gt.f32.partialorder %v1035_v2, 0.0  ;;  %vm109_vm3 = vcmp.gt.f32.partialorder %v1048_v7, 0.0  ;;  %v1070_v13 = vld [vmem:[%s1769_s1 + $0x10] sm:$0xff]  ;;  %v1076_v15 = vld [vmem:[%s1769_s1 + $0x18] sm:$0xff] }
   0x4   :  { %v875_v8 = vpack.i.bf16 %v1043_v6, %v1040_v5  ;;  %v834_v10 = vsel %vm108_vm2, 1.0, %v1005_v4  ;;  %v835_v12 = vsel %vm109_vm3, 1.0, %v1005_v4  ;;  %vm115_vm5 = vcmp.gt.f32.partialorder %v1063_v11, 0.0  ;;  %v1087_v18 = vld [vmem:[%s1769_s1 + $0x50] sm:$0xff]  ;;  %v1096_v20 = vld [vmem:[%s1769_s1 + $0x58] sm:$0xff]  ;;  %v1103_v23 = vld [vmem:[%s1769_s1 + $0x40] sm:$0xff] }
   0x5   :  { %v864_v14 = vpack.i.bf16 %v835_v12, %v834_v10  ;;  %v1079_v16 = vsel %vm114_vm4, 1.0, %v1005_v4  ;;  %v1082_v17 = vsel %vm115_vm5, 1.0, %v1005_v4  ;;  %vm110_vm6 = vcmp.gt.f32.partialorder %v1070_v13, 0.0  ;;  %v1109_v25 = vld [vmem:[%s1769_s1 + $0x48] sm:$0xff] }
   0x6   :  { %876 = vperm.xlu1 %874, %v875_v8   ;;  %v880_v19 = vpack.i.bf16 %v1082_v17, %v1079_v16  ;;  %vm111_vm7 = vcmp.gt.f32.partialorder %v1076_v15, 0.0  ;;  %v836_v21 = vsel %vm110_vm6, 1.0, %v1005_v4  ;;  %vm118_vm8 = vcmp.gt.f32.partialorder %v1087_v18, 0.0 }
   0x7   :  { %865 = vperm.xlu0 %863, %v864_v14   ;;  %v837_v22 = vsel %vm111_vm7, 1.0, %v1005_v4  ;;  %vm119_vm9 = vcmp.gt.f32.partialorder %v1096_v20, 0.0  ;;  %v1113_v26 = vsel %vm118_vm8, 1.0, %v1005_v4  ;;  %vm116_vm10 = vcmp.gt.f32.partialorder %v1103_v23, 0.0 }
   0x8   :  { %v869_v24 = vpack.i.bf16 %v837_v22, %v836_v21  ;;  %v1116_v27 = vsel %vm119_vm9, 1.0, %v1005_v4  ;;  %vm117_vm11 = vcmp.gt.f32.partialorder %v1109_v25, 0.0  ;;  %v1123_v29 = vsel %vm116_vm10, 1.0, %v1005_v4 }
   0x9   :  { %v890_v28 = vpack.i.bf16 %v1116_v27, %v1113_v26  ;;  %v843_v30 = vsel %vm117_vm11, 1.0, %v1005_v4  ;;  %vm149_vm12 = vcmp.eq.f32.partialorder %v1070_v13, 0.0  ;;  %vm150_vm13 = vcmp.eq.f32.partialorder %v1076_v15, 0.0 }
   0xa   :  { %881 = vperm.xlu1 %874, %v880_v19   ;;  %v885_v31 = vpack.i.bf16 %v843_v30, %v1123_v29  ;;  %v849_v32 = vsel %vm149_vm12, 1.0, %v1005_v4  ;;  %vm147_vm14 = vcmp.eq.f32.partialorder %v1035_v2, 0.0  ;;  %v850_v33 = vsel %vm150_vm13, 1.0, %v1005_v4 }
   0xb   :  { %870 = vperm.xlu0 %863, %v869_v24   ;;  %vm148_vm15 = vcmp.eq.f32.partialorder %v1048_v7, 0.0  ;;  %v900_v34 = vpack.i.bf16 %v850_v33, %v849_v32  ;;  %v847_v35 = vsel %vm147_vm14, 1.0, %v1005_v4  ;;  %v653_v38 = vmul.f32 5.0, %v835_v12 }
   0xc   :  { %v848_v36 = vsel %vm148_vm15, 1.0, %v1005_v4  ;;  %vm151_vm0 = vcmp.eq.f32.partialorder %v1025_v0, 0.0  ;;  %vm152_vm1 = vcmp.eq.f32.partialorder %v1030_v1, 0.0 }
   0xd   :  { %v895_v37 = vpack.i.bf16 %v848_v36, %v847_v35 }
   0xe   :  { %891 = vperm.xlu1 %874, %v890_v28  }
   0xf   :  { %886 = vperm.xlu0 %863, %v885_v31  }
  0x12   :  { %901 = vperm.xlu1 %874, %v900_v34  }
  0x13   :  { %7 = vsyncpa [#allocation3], 0  ;;  %v652_v39 = vmul.f32 5.0, %v834_v10  ;;  %896 = vperm.xlu0 %863, %v895_v37   ;;  %vm153_vm2 = vcmp.eq.f32.partialorder %v1056_v9, 0.0  ;;  %vm154_vm3 = vcmp.eq.f32.partialorder %v1063_v11, 0.0  ;;  %v851_v40 = vsel %vm151_vm0, 1.0, %v1005_v4 }
  0x14   :  { %v852_v41 = vsel %vm152_vm1, 1.0, %v1005_v4  ;;  %v654_v42 = vmul.f32 5.0, %v836_v21  ;;  %v853_v43 = vsel %vm153_vm2, 1.0, %v1005_v4  ;;  %v854_v44 = vsel %vm154_vm3, 1.0, %v1005_v4  ;;  %v1159_v57 = vld [vmem:[%s1769_s1 + $0x60] sm:$0x3] }
  0x15   :  { %v905_v45 = vpack.i.bf16 %v852_v41, %v851_v40  ;;  %v910_v46 = vpack.i.bf16 %v854_v44, %v853_v43  ;;  %v655_v47 = vmul.f32 5.0, %v837_v22  ;;  %v657_v48 = vmul.f32 5.0, %v1043_v6  ;;  %1774 = vst [vmem:[#allocation5_spill] sm:$0xff] %v1159_v57  ;;  %v83_v8 = vld [vmem:[%s1768_s0 + $0x8] sm:$0xff]  ;;  %v82_v12 = vld [vmem:[%s1768_s0] sm:$0xff]  ;;  %v84_v14 = vld [vmem:[%s1768_s0 + $0x10] sm:$0xff] }
  0x16   :  { %685 = vperm.xlu1 %874, %v653_v38   ;;  %vm155_vm4 = vcmp.eq.f32.partialorder %v1103_v23, 0.0  ;;  %vm156_vm5 = vcmp.eq.f32.partialorder %v1109_v25, 0.0  ;;  %v656_v49 = vmul.f32 5.0, %v1040_v5  ;;  %vm157_vm6 = vcmp.eq.f32.partialorder %v1087_v18, 0.0  ;;  %v85_v31 = vld [vmem:[%s1768_s0 + $0x18] sm:$0xff]  ;;  %v1209_v41 = vld [vmem:[%s1768_s0 + $0x28] sm:$0xff] }
  0x17   :  { %680 = vperm.xlu0 %863, %v652_v39   ;;  %vm158_vm7 = vcmp.eq.f32.partialorder %v1096_v20, 0.0  ;;  %v855_v50 = vsel %vm155_vm4, 1.0, %v1005_v4  ;;  %v856_v51 = vsel %vm156_vm5, 1.0, %v1005_v4  ;;  %vm1771_vm8 = vcmask 244736  }
  0x18   :  { %v658_v52 = vmul.f32 5.0, %v1079_v16  ;;  %81 = vst.msk [vmem:[#allocation2] sm:$0xff] %vm1771_vm8, %v1005_v4  ;;  %v857_v53 = vsel %vm157_vm6, 1.0, %v1005_v4  ;;  %v858_v54 = vsel %vm158_vm7, 1.0, %v1005_v4  ;;  %v915_v55 = vpack.i.bf16 %v856_v51, %v855_v50 }
  0x19   :  { %v920_v56 = vpack.i.bf16 %v858_v54, %v857_v53  ;;  %v659_v58 = vmul.f32 5.0, %v1082_v17  ;;  %v661_v59 = vmul.f32 5.0, %v843_v30  ;;  %vm120_vm9 = vcmp.gt.f32.partialorder %v1159_v57, 0.0 }
  0x1a   :  { %690 = vperm.xlu1 %874, %v654_v42   ;;  %vm159_vm10 = vcmp.eq.f32.partialorder %v1159_v57, 0.0  ;;  %v660_v60 = vmul.f32 5.0, %v1123_v29  ;;  %v846_v61 = vsel %vm120_vm9, 1.0, %v1005_v4  ;;  %v662_v63 = vmul.f32 5.0, %v1113_v26 }
  0x1b   :  { %906 = vperm.xlu0 %863, %v905_v45   ;;  %v859_v62 = vsel %vm159_vm10, 1.0, %v1005_v4  ;;  %v664_v5 = vmul.f32 5.0, %v846_v61  ;;  %v663_v6 = vmul.f32 5.0, %v1116_v27  ;;  %v523_v10 = vadd.f32 1e-06, %v1048_v7 }
  0x1c   :  { %v925_v3 = vpack.i.bf16 %v859_v62, %v846_v61  ;;  %v406_v16 = vadd.f32 1e-06, %v83_v8  ;;  %v526_v17 = vadd.f32 1e-06, %v1025_v0  ;;  %v522_v19 = vadd.f32 1e-06, %v1035_v2 }
  0x1d   :  { %v527_v21 = vadd.f32 1e-06, %v1030_v1  ;;  %v1182_v22 = vand.u32 2147483647, %v523_v10  ;;  %v405_v24 = vadd.f32 1e-06, %v82_v12  ;;  %v186_v28 = vlaneseq }
  0x1e   :  { %911 = vperm.xlu1 %874, %v910_v46   ;;  %v528_v26 = vadd.f32 1e-06, %v1056_v9  ;;  %v529_v27 = vadd.f32 1e-06, %v1063_v11  ;;  %v407_v29 = vadd.f32 1e-06, %v84_v14  ;;  %v368_v54 = vsub.f32 %v84_v14, %v1070_v13 }
  0x1f   :  { %695 = vperm.xlu0 %863, %v655_v47   ;;  %v524_v30 = vadd.f32 1e-06, %v1070_v13  ;;  %v1190_v32 = vand.u32 2147483647, %v406_v16  ;;  %v1192_v33 = vand.u32 2147483647, %v526_v17  ;;  %930 = vrsqrt.f32 %v1182_v22 }
  0x20   :  { %v1194_v34 = vand.u32 2147483647, %v522_v19  ;;  %v1196_v35 = vand.u32 2147483647, %v527_v21  ;;  %v525_v36 = vadd.f32 1e-06, %v1076_v15  ;;  %v367_v61 = vsub.f32 %v83_v8, %v1048_v7 }
  0x21   :  { %v1199_v37 = vand.u32 2147483647, %v405_v24  ;;  %v1201_v38 = vand.u32 127, %v186_v28  ;;  %v408_v39 = vadd.f32 1e-06, %v85_v31  ;;  %932 = vrsqrt.f32 %v1190_v32  ;;  %v86_v47 = vld [vmem:[%s1768_s0 + $0x20] sm:$0xff] }
  0x22   :  { %705 = vperm.xlu1 %874, %v657_v48   ;;  %v1203_v40 = vand.u32 2147483647, %v407_v29  ;;  %v1211_v42 = vand.u32 2147483647, %v528_v26  ;;  %v1213_v43 = vand.u32 2147483647, %v529_v27  ;;  %934 = vrsqrt.f32 %v1194_v34 }
  0x23   :  { %700 = vperm.xlu0 %863, %v656_v49   ;;  %v1215_v44 = vand.u32 2147483647, %v524_v30  ;;  %v532_v45 = vadd.f32 1e-06, %v1087_v18  ;;  %v533_v46 = vadd.f32 1e-06, %v1096_v20  ;;  %936 = vrsqrt.f32 %v1199_v37 }
  0x24   :  { %v1224_v48 = vand.u32 2147483647, %v525_v36  ;;  %v530_v49 = vadd.f32 1e-06, %v1103_v23  ;;  %v410_v50 = vadd.f32 1e-06, %v1209_v41  ;;  %938 = vrsqrt.f32 %v1203_v40 }
  0x25   :  { %v531_v51 = vadd.f32 1e-06, %v1109_v25  ;;  %vm189_vm11 = vcmp.ge.s32.totalorder %v1201_v38, 4  ;;  %v534_v53 = vadd.f32 1e-06, %v1159_v57  ;;  %940 = vrsqrt.f32 %v1215_v44  ;;  %v88_v13 = vld [vmem:[%s1768_s0 + $0x30] sm:$0xff] }
  0x26   :  { %710 = vperm.xlu1 %874, %v658_v52   ;;  %v1231_v52 = vand.u32 2147483647, %v408_v39  ;;  %vm188_vm12 = vcmp.lt.s32.totalorder %v1201_v38, 2  ;;  %vm192_vm13 = vcmp.eq.s32.totalorder %v1201_v38, 4  ;;  %v1245_v62 = vand.u32 2147483647, %v410_v50 }
  0x27   :  { %916 = vperm.xlu0 %863, %v915_v55   ;;  %v409_v55 = vadd.f32 1e-06, %v86_v47  ;;  %v1271_v8 = vsel %vm192_vm13, 0.5, %v1005_v4  ;;  %v1277_v16 = vmul.f32 %v367_v61, %v367_v61  ;;  %vm557_vm14 = vcmp.eq.f32.partialorder %v1182_v22, inf }
  0x28   :  { %942 = vrsqrt.f32 %v1231_v52  ;;  %vm559_vm15 = vcmp.eq.f32.partialorder %v1182_v22, 0.0  ;;  %v560_v17 = vand.u32 2147483648, %v1182_v22  ;;  %vm550_vm0 = vcmp.eq.f32.partialorder %v1194_v34, inf }
  0x29   :  { %944 = vrsqrt.f32 %v1224_v48  ;;  %vm440_vm1 = vcmp.eq.f32.partialorder %v1190_v32, inf  ;;  %vm442_vm2 = vcmp.eq.f32.partialorder %v1190_v32, 0.0  ;;  %v443_v21 = vand.u32 2147483648, %v1190_v32 }
  0x2a   :  { %921 = vperm.xlu1 %874, %v920_v56   ;;  %v1237_v56 = vand.u32 2147483647, %v532_v45  ;;  %946 = vrsqrt.f32 %v1245_v62  ;;  %vm433_vm3 = vcmp.eq.f32.partialorder %v1199_v37, inf  ;;  %v370_v26 = vsub.f32 %v86_v47, %v1025_v0 }
  0x2b   :  { %715 = vperm.xlu0 %863, %v659_v58   ;;  %v369_v58 = vsub.f32 %v85_v31, %v1076_v15  ;;  %v1257_v15 = vand.u32 2147483647, %v534_v53  ;;  %948 = vrsqrt.f32 %v1196_v35  ;;  %v436_v29 = vand.u32 2147483648, %v1199_v37 }
  0x2c   :  { %v931_v19 = vpop.eup %930  ;;  %vm552_vm4 = vcmp.eq.f32.partialorder %v1194_v34, 0.0  ;;  %v371_v30 = vsub.f32 %v1209_v41, %v1030_v1  ;;  %vm435_vm5 = vcmp.eq.f32.partialorder %v1199_v37, 0.0  ;;  %v553_v0 = vand.u32 2147483648, %v1194_v34 }
  0x2d   :  { %v1273_v10 = vmul.f32 %v369_v58, %v369_v58  ;;  %v556_v39 = vmul.f32 %v931_v19, %v1182_v22  ;;  %vm447_vm6 = vcmp.eq.f32.partialorder %v1203_v40, inf  ;;  %vm449_vm7 = vcmp.eq.f32.partialorder %v1203_v40, 0.0 }
  0x2e   :  { %725 = vperm.xlu1 %874, %v661_v59   ;;  %v190_v59 = vsel %vm189_vm11, 1.0, %v1005_v4  ;;  %v89_v4 = vld [vmem:[%s1768_s0 + $0x38] sm:$0xff]  ;;  %v933_v24 = vpop.eup %932  ;;  %vm564_vm9 = vcmp.eq.f32.partialorder %v1215_v44, inf  ;;  %vm566_vm10 = vcmp.eq.f32.partialorder %v1215_v44, 0.0  ;;  %v567_v1 = vand.u32 2147483648, %v1215_v44 }
  0x2f   :  { %720 = vperm.xlu0 %863, %v660_v60   ;;  %v366_v60 = vsub.f32 %v82_v12, %v1035_v2  ;;  %v1261_v2 = vand.u32 2147483647, %v409_v55  ;;  %v1266_v7 = vsel %vm188_vm12, 5.0, %v190_v59  ;;  %v411_v12 = vadd.f32 1e-06, %v88_v13  ;;  %v935_v28 = vpop.eup %934 }
  0x30   :  { %v412_v31 = vadd.f32 1e-06, %v89_v4  ;;  %v937_v36 = vpop.eup %936  ;;  %v439_v47 = vmul.f32 %v933_v24, %v1190_v32  ;;  %v1314_v50 = vsub.f32 %v88_v13, %v1056_v9  ;;  %v549_v53 = vmul.f32 %v935_v28, %v1194_v34 }
  0x31   :  { %v1275_v14 = vmul.f32 %v366_v60, %v366_v60  ;;  %950 = vrsqrt.f32 %v1261_v2  ;;  %v1294_v27 = vand.u32 2147483647, %v411_v12  ;;  %v558_v58 = vsel %vm557_vm14, %v1182_v22, %v556_v39 }
  0x32   :  { %730 = vperm.xlu1 %874, %v662_v63   ;;  %v1250_v63 = vand.u32 2147483647, %v533_v46  ;;  %952 = vrsqrt.f32 %v1192_v33  ;;  %v939_v46 = vpop.eup %938  ;;  %v1323_v55 = vand.u32 2147483647, %v412_v31  ;;  %v432_v9 = vmul.f32 %v937_v36, %v1199_v37 }
  0x33   :  { %926 = vperm.xlu0 %863, %v925_v3   ;;  %v1252_v3 = vand.u32 2147483647, %v530_v49  ;;  %v941_v41 = vpop.eup %940  ;;  %v1311_v49 = vmul.f32 %v370_v26, %v370_v26  ;;  %954 = vrsqrt.f32 %v1294_v27  ;;  %v446_v59 = vmul.f32 %v939_v46, %v1203_v40  ;;  %v1352_v26 = vld [vmem:[%s1768_s0 + $0x40] sm:$0xff] }
  0x34   :  { %956 = vrsqrt.f32 %v1211_v42  ;;  %v441_v61 = vsel %vm440_vm1, %v1190_v32, %v439_v47  ;;  %v563_v13 = vmul.f32 %v941_v41, %v1215_v44  ;;  %v457_v12 = vand.u32 2147483648, %v1231_v52 }
  0x35   :  { %v943_v60 = vpop.eup %942  ;;  %vm571_vm12 = vcmp.eq.f32.partialorder %v1224_v48, inf  ;;  %vm456_vm13 = vcmp.eq.f32.partialorder %v1231_v52, 0.0  ;;  %vm573_vm14 = vcmp.eq.f32.partialorder %v1224_v48, 0.0  ;;  %v574_v19 = vand.u32 2147483648, %v1224_v48 }
  0x36   :  { %740 = vperm.xlu1 %874, %v664_v5   ;;  %v1254_v5 = vand.u32 2147483647, %v531_v51  ;;  %v1317_v51 = vsub.f32 %v89_v4, %v1063_v11  ;;  %v1335_v11 = vld [vmem:[%s1768_s0 + $0x48] sm:$0xff]  ;;  %v945_v4 = vpop.eup %944  ;;  %vm468_vm8 = vcmp.eq.f32.partialorder %v1245_v62, inf  ;;  %v471_v24 = vand.u32 2147483648, %v1245_v62 }
  0x37   :  { %735 = vperm.xlu0 %863, %v663_v6   ;;  %v1259_v6 = vmul.f32 %v368_v54, %v368_v54  ;;  %v1321_v54 = vmul.f32 %v371_v30, %v371_v30  ;;  %vm585_vm11 = vcmp.eq.f32.partialorder %v1196_v35, inf  ;;  %v561_v28 = vsel %vm559_vm15, %v560_v17, %v558_v58  ;;  %v947_v39 = vpop.eup %946 }
  0x38   :  { %v551_v30 = vsel %vm550_vm0, %v1194_v34, %v549_v53  ;;  %v588_v31 = vand.u32 2147483648, %v1196_v35  ;;  %v414_v36 = vadd.f32 1e-06, %v1335_v11  ;;  %v444_v46 = vsel %vm442_vm2, %v443_v21, %v441_v61  ;;  %v949_v17 = vpop.eup %948  ;;  %v92_v34 = vld [vmem:[%s1768_s0 + $0x50] sm:$0xff] }
  0x39   :  { %v434_v47 = vsel %vm433_vm3, %v1199_v37, %v432_v9  ;;  %v448_v22 = vsel %vm447_vm6, %v1203_v40, %v446_v59  ;;  %vm470_vm15 = vcmp.eq.f32.partialorder %v1245_v62, 0.0  ;;  %vm587_vm0 = vcmp.eq.f32.partialorder %v1196_v35, 0.0 }
  0x3a   :  { %vm461_vm1 = vcmp.eq.f32.partialorder %v1261_v2, inf  ;;  %v565_v32 = vsel %vm564_vm9, %v1215_v44, %v563_v13  ;;  %v453_v21 = vmul.f32 %v943_v60, %v1231_v52  ;;  %v570_v41 = vmul.f32 %v945_v4, %v1224_v48 }
  0x3b   :  { %v413_v53 = vadd.f32 1e-06, %v1352_v26  ;;  %v554_v9 = vsel %vm552_vm4, %v553_v0, %v551_v30  ;;  %vm463_vm2 = vcmp.eq.f32.partialorder %v1261_v2, 0.0  ;;  %v464_v59 = vand.u32 2147483648, %v1261_v2 }
  0x3c   :  { %vm578_vm3 = vcmp.eq.f32.partialorder %v1192_v33, inf  ;;  %vm580_vm6 = vcmp.eq.f32.partialorder %v1192_v33, 0.0  ;;  %v640_v13 = vsub.f32 %v444_v46, %v561_v28  ;;  %v437_v60 = vsel %vm435_vm5, %v436_v29, %v434_v47 }
  0x3d   :  { %v581_v4 = vand.u32 2147483648, %v1192_v33  ;;  %v1389_v45 = vand.u32 2147483647, %v414_v36  ;;  %v1775_v0 = vand.u32 2147483648, %v1203_v40  ;;  %v568_v28 = vsel %vm566_vm10, %v567_v1, %v565_v32 }
  0x3e   :  { %v951_v58 = vpop.eup %950  ;;  %v467_v46 = vmul.f32 %v947_v39, %v1245_v62  ;;  %v584_v37 = vmul.f32 %v949_v17, %v1196_v35  ;;  %vm1776_vm4 = vcmp.eq.f32.partialorder %v1231_v52, inf  ;;  %v572_v36 = vsel %vm571_vm12, %v1224_v48, %v570_v41 }
  0x3f   :  { %v953_v61 = vpop.eup %952  ;;  %v451_v30 = vsel %vm449_vm7, %v1775_v0, %v448_v22  ;;  %v455_v29 = vsel %vm1776_vm4, %v1231_v52, %v453_v21  ;;  %v1408_v47 = vand.u32 2147483647, %v413_v53  ;;  %958 = vrsqrt.f32 %v1323_v55 }
  0x40   :  { %v460_v40 = vmul.f32 %v951_v58, %v1261_v2  ;;  %v577_v44 = vmul.f32 %v953_v61, %v1192_v33  ;;  %v415_v1 = vadd.f32 1e-06, %v92_v34  ;;  %960 = vrsqrt.f32 %v1213_v43  ;;  %v955_v39 = vpop.eup %954 }
  0x41   :  { %v639_v22 = vsub.f32 %v437_v60, %v554_v9  ;;  %vm475_vm5 = vcmp.eq.f32.partialorder %v1294_v27, inf  ;;  %vm477_vm7 = vcmp.eq.f32.partialorder %v1294_v27, 0.0  ;;  %962 = vrsqrt.f32 %v1389_v45  ;;  %v957_v17 = vpop.eup %956 }
  0x42   :  { %v469_v32 = vsel %vm468_vm8, %v1245_v62, %v467_v46  ;;  %v586_v21 = vsel %vm585_vm11, %v1196_v35, %v584_v37  ;;  %v478_v41 = vand.u32 2147483648, %v1294_v27  ;;  %964 = vrsqrt.f32 %v1254_v5  ;;  %v93_v62 = vld [vmem:[%s1768_s0 + $0x58] sm:$0xff] }
  0x43   :  { %v641_v53 = vsub.f32 %v451_v30, %v568_v28  ;;  %v458_v58 = vsel %vm456_vm13, %v457_v12, %v455_v29  ;;  %v575_v9 = vsel %vm573_vm14, %v574_v19, %v572_v36  ;;  %966 = vrsqrt.f32 %v1408_v47 }
  0x44   :  { %v462_v61 = vsel %vm461_vm1, %v1261_v2, %v460_v40  ;;  %v579_v60 = vsel %vm578_vm3, %v1192_v33, %v577_v44  ;;  %v1436_v0 = vand.u32 2147483647, %v415_v1  ;;  %968 = vrsqrt.f32 %v1252_v3 }
  0x45   :  { %v472_v52 = vsel %vm470_vm15, %v471_v24, %v469_v32  ;;  %v589_v48 = vsel %vm587_vm0, %v588_v31, %v586_v21  ;;  %v474_v12 = vmul.f32 %v955_v39, %v1294_v27  ;;  %v591_v19 = vmul.f32 %v957_v17, %v1211_v42 }
  0x46   :  { %vm592_vm8 = vcmp.eq.f32.partialorder %v1211_v42, inf  ;;  %vm594_vm9 = vcmp.eq.f32.partialorder %v1211_v42, 0.0  ;;  %v595_v30 = vand.u32 2147483648, %v1211_v42  ;;  %v374_v28 = vsub.f32 %v1352_v26, %v1103_v23 }
  0x47   :  { %v465_v35 = vsel %vm463_vm2, %v464_v59, %v462_v61  ;;  %v582_v24 = vsel %vm580_vm6, %v581_v4, %v579_v60  ;;  %v375_v31 = vsub.f32 %v1335_v11, %v1109_v25  ;;  %v376_v46 = vsub.f32 %v92_v34, %v1087_v18 }
  0x48   :  { %v642_v37 = vsub.f32 %v458_v58, %v575_v9  ;;  %v644_v29 = vsub.f32 %v472_v52, %v589_v48  ;;  %v377_v36 = vsub.f32 %v93_v62, %v1096_v20  ;;  %970 = vrsqrt.f32 %v1436_v0  ;;  %v1513_v9 = vld [vmem:[%s1768_s0 + $0x60] sm:$0x3]  ;;  %s1006_s0 = smov [#allocation2]  }
  0x49   :  { %v476_v23 = vsel %vm475_vm5, %v1294_v27, %v474_v12  ;;  %v593_v2 = vsel %vm592_vm8, %v1211_v42, %v591_v19  ;;  %v416_v26 = vadd.f32 1e-06, %v93_v62  ;;  %972 = vrsqrt.f32 %v1237_v56  ;;  %1777 = vst [vmem:[#allocation6_spill] sm:$0xff] %v1513_v9  ;;  %s814_s4 = sshll.u32 %s1006_s0, 4  ;;  %s815_s4 = int_to_ptr.vmem [resolvable:$true] %s814_s4 }
  0x4a   :  { %v1467_v33 = vmul.f32 %v640_v13, %v640_v13  ;;  %v1471_v18 = vmul.f32 %v1314_v50, %v1314_v50  ;;  %v1475_v20 = vmul.f32 %v1317_v51, %v1317_v51  ;;  %v643_v25 = vsub.f32 %v465_v35, %v582_v24  ;;  %s982_s5 = scalar_lea.vmem %s815_s4, 128  ;;  %p987_p1 = scmp.lt.s32.totalorder %s815_s4, %s815_s4 }
  0x4b   :  { %v1477_v11 = vmul.f32 %v639_v22, %v639_v22  ;;  %v1479_v59 = vmul.f32 %v641_v53, %v641_v53  ;;  %v1481_v4 = vmul.f32 %v374_v28, %v374_v28  ;;  %v1483_v34 = vmul.f32 %v375_v31, %v375_v31  ;;  %p983_p0 = scmp.ne.s32.totalorder %s815_s4, %s982_s5  ;;  %p988_p2 = scmp.lt.s32.totalorder %s982_s5, %s982_s5 }
  0x4c   :  { %v959_v40 = vpop.eup %958  ;;  %v1485_v13 = vmul.f32 %v642_v37, %v642_v37  ;;  %v479_v50 = vsel %vm477_vm7, %v478_v41, %v476_v23  ;;  %v596_v44 = vsel %vm594_vm9, %v595_v30, %v593_v2  ;;  %v1491_v51 = vmul.f32 %v376_v46, %v376_v46 }
  0x4d   :  { %v961_v1 = vpop.eup %960  ;;  %v1493_v39 = vmul.f32 %v644_v29, %v644_v29  ;;  %v1495_v22 = vmul.f32 %v377_v36, %v377_v36  ;;  %v1497_v17 = vand.u32 2147483647, %v416_v26  ;;  %vm482_vm10 = vcmp.eq.f32.partialorder %v1323_v55, inf  ;;  %p989_p3 = por %p988_p2, %p987_p1 }
  0x4e   :  { %v963_v32 = vpop.eup %962  ;;  %v1502_v53 = vmul.f32 %v643_v25, %v643_v25  ;;  %vm484_vm11 = vcmp.eq.f32.partialorder %v1323_v55, 0.0  ;;  %v485_v42 = vand.u32 2147483648, %v1323_v55  ;;  %vm599_vm12 = vcmp.eq.f32.partialorder %v1213_v43, inf }
  0x4f   :  { %v965_v27 = vpop.eup %964  ;;  %v645_v41 = vsub.f32 %v479_v50, %v596_v44  ;;  %vm601_vm13 = vcmp.eq.f32.partialorder %v1213_v43, 0.0  ;;  %v602_v58 = vand.u32 2147483648, %v1213_v43  ;;  %vm496_vm14 = vcmp.eq.f32.partialorder %v1389_v45, inf  ;;  %p990_p4 = pnand %p989_p3, %p983_p0 }
  0x50   :  { %v967_v61 = vpop.eup %966  ;;  %vm498_vm15 = vcmp.eq.f32.partialorder %v1389_v45, 0.0  ;;  %v499_v60 = vand.u32 2147483648, %v1389_v45  ;;  %vm613_vm0 = vcmp.eq.f32.partialorder %v1254_v5, inf  ;;  %vm615_vm1 = vcmp.eq.f32.partialorder %v1254_v5, 0.0 }
  0x51   :  { %v616_v52 = vand.u32 2147483648, %v1254_v5  ;;  %v969_v48 = vpop.eup %968  ;;  %vm489_vm2 = vcmp.eq.f32.partialorder %v1408_v47, inf  ;;  %vm491_vm3 = vcmp.eq.f32.partialorder %v1408_v47, 0.0  ;;  %v492_v19 = vand.u32 2147483648, %v1408_v47 }
  0x52   :  { %vm606_vm6 = vcmp.eq.f32.partialorder %v1252_v3, inf  ;;  %v481_v30 = vmul.f32 %v959_v40, %v1323_v55  ;;  %v598_v28 = vmul.f32 %v961_v1, %v1213_v43  ;;  %v417_v62 = vadd.f32 1e-06, %v1513_v9 }
  0x53   :  { %974 = vrsqrt.f32 %v1257_v15  ;;  %v1532_v24 = vmul.f32 %v645_v41, %v645_v41  ;;  %vm608_vm4 = vcmp.eq.f32.partialorder %v1252_v3, 0.0  ;;  %v609_v31 = vand.u32 2147483648, %v1252_v3 }
  0x54   :  { %976 = vrsqrt.f32 %v1497_v17  ;;  %v495_v46 = vmul.f32 %v963_v32, %v1389_v45  ;;  %v612_v37 = vmul.f32 %v965_v27, %v1254_v5  ;;  %v488_v29 = vmul.f32 %v967_v61, %v1408_v47 }
  0x55   :  { %v605_v36 = vmul.f32 %v969_v48, %v1252_v3  ;;  %v971_v23 = vpop.eup %970  ;;  %vm503_vm5 = vcmp.eq.f32.partialorder %v1436_v0, inf  ;;  %vm505_vm7 = vcmp.eq.f32.partialorder %v1436_v0, 0.0  ;;  %v506_v26 = vand.u32 2147483648, %v1436_v0 }
  0x56   :  { %vm620_vm8 = vcmp.eq.f32.partialorder %v1237_v56, inf  ;;  %v973_v25 = vpop.eup %972  ;;  %v483_v40 = vsel %vm482_vm10, %v1323_v55, %v481_v30  ;;  %v600_v50 = vsel %vm599_vm12, %v1213_v43, %v598_v28  ;;  %vm622_vm9 = vcmp.eq.f32.partialorder %v1237_v56, 0.0 }
  0x57   :  { %v1552_v44 = vand.u32 2147483647, %v417_v62  ;;  %v623_v1 = vand.u32 2147483648, %v1237_v56  ;;  %978 = vrsqrt.f32 %v1250_v63  ;;  %v497_v61 = vsel %vm496_vm14, %v1389_v45, %v495_v46 }
  0x58   :  { %v614_v48 = vsel %vm613_vm0, %v1254_v5, %v612_v37  ;;  %v490_v30 = vsel %vm489_vm2, %v1408_v47, %v488_v29  ;;  %v607_v28 = vsel %vm606_vm6, %v1252_v3, %v605_v36  ;;  %vm194_vm10 = vcmp.ge.s32.totalorder %v1201_v38, 2 }
  0x59   :  { %vm195_vm12 = vcmp.lt.s32.totalorder %v1201_v38, 4  ;;  %v486_v62 = vsel %vm484_vm11, %v485_v42, %v483_v40  ;;  %v603_v46 = vsel %vm601_vm13, %v602_v58, %v600_v50  ;;  %v502_v37 = vmul.f32 %v971_v23, %v1436_v0 }
  0x5a   :  { %v619_v32 = vmul.f32 %v973_v25, %v1237_v56  ;;  %980 = vrsqrt.f32 %v1552_v44  ;;  %v520_v36 = vand.u32 2147483648, %v1552_v44  ;;  %v500_v57 = vsel %vm498_vm15, %v499_v60, %v497_v61  ;;  %vm1630_vm13 = vmand %vm194_vm10, %vm195_vm12 }
  0x5b   :  { %v617_v55 = vsel %vm615_vm1, %v616_v52, %v614_v48  ;;  %v493_v43 = vsel %vm491_vm3, %v492_v19, %v490_v30  ;;  %v610_v42 = vsel %vm608_vm4, %v609_v31, %v607_v28  ;;  %v646_v25 = vsub.f32 %v486_v62, %v603_v46 }
  0x5c   :  { %v630_v40 = vand.u32 2147483648, %v1250_v63  ;;  %v504_v5 = vsel %vm503_vm5, %v1436_v0, %v502_v37  ;;  %v621_v47 = vsel %vm620_vm8, %v1237_v56, %v619_v32  ;;  %v647_v19 = vsub.f32 %v493_v43, %v610_v42 }
  0x5d   :  { %vm510_vm11 = vcmp.eq.f32.partialorder %v1497_v17, inf  ;;  %vm634_vm14 = vcmp.eq.f32.partialorder %v1257_v15, inf  ;;  %vm517_vm15 = vcmp.eq.f32.partialorder %v1552_v44, inf  ;;  %vm512_vm0 = vcmp.eq.f32.partialorder %v1497_v17, 0.0 }
  0x5e   :  { %vm627_vm1 = vcmp.eq.f32.partialorder %v1250_v63, inf  ;;  %vm1780_vm2 = vcmask 244736   ;;  %vm629_vm4 = vcmp.eq.f32.partialorder %v1250_v63, 0.0  ;;  %vm636_vm5 = vcmp.eq.f32.partialorder %v1257_v15, 0.0 }
  0x5f   :  { %vm1781_vm3 = vmmov %vm1780_vm2  ;;  %vm519_vm8 = vcmp.eq.f32.partialorder %v1552_v44, 0.0 }
  0x60   :  { %v975_v31 = vpop.eup %974  ;;  %vm1782_vm6 = vmmov %vm1780_vm2 }
  0x61   :  { %v977_v62 = vpop.eup %976  ;;  %vm1786_vm10 = vmmov %vm1780_vm2 }
  0x62   :  { %vm1787_vm12 = vmmov %vm1780_vm2 }
  0x81   :  { %v1500_v21 = vpop.permute.xlu1 %876 }
  0x82   :  { %v1520_v12 = vpop.permute.xlu0 %865 }
  0x83   :  { %v868_v58 = vunpack.i.h.bf16 %v1520_v12  ;;  %v867_v23 = vunpack.i.l.bf16 %v1520_v12  ;;  %v648_v12 = vsub.f32 %v500_v57, %v617_v55  ;;  %v624_v57 = vsel %vm622_vm9, %v623_v1, %v621_v47  ;;  %vm1785_vm9 = vmmov %vm1780_vm2 }
  0x85   :  { %v1530_v35 = vpop.permute.xlu1 %881  ;;  %v263_v46 = vmul.f32 %v868_v58, %v1266_v7  ;;  %v262_v37 = vmul.f32 %v867_v23, %v1266_v7  ;;  %v1616_v58 = vmul.f32 %v648_v12, %v648_v12  ;;  %v1619_v23 = vmul.f32 %v975_v31, %v1257_v15 }
  0x86   :  { %v871_v2 = vpop.permute.xlu0 %870 }
  0x87   :  { %v873_v27 = vunpack.i.h.bf16 %v871_v2  ;;  %v872_v29 = vunpack.i.l.bf16 %v871_v2 }
  0x89   :  { %v1558_v41 = vpop.permute.xlu1 %891  ;;  %v265_v3 = vmul.f32 %v873_v27, %v1266_v7  ;;  %v264_v60 = vmul.f32 %v872_v29, %v1266_v7  ;;  %v507_v27 = vsel %vm505_vm7, %v506_v26, %v504_v5  ;;  %v979_v5 = vpop.eup %978  ;;  %vm1783_vm7 = vmmov %vm1780_vm2 }
  0x8a   :  { %v1580_v9 = vpop.permute.xlu0 %886 }
  0x8d   :  { %v902_v2 = vpop.permute.xlu1 %901 }
  0x8e   :  { %v904_v50 = vunpack.i.h.bf16 %v902_v2  ;;  %v903_v45 = vunpack.i.l.bf16 %v902_v2  ;;  %v897_v52 = vpop.permute.xlu0 %896  ;;  %v879_v2 = vunpack.i.h.bf16 %v1500_v21 }
  0x8f   :  { %v899_v30 = vunpack.i.h.bf16 %v897_v52  ;;  %v898_v28 = vunpack.i.l.bf16 %v897_v52 }
  0x90   :  { %v343_v61 = vmul.f32 %v904_v50, %v1271_v8  ;;  %v342_v48 = vmul.f32 %v903_v45, %v1271_v8  ;;  %v1614_v45 = vmul.f32 %v646_v25, %v646_v25 }
  0x91   :  { %v686_v32 = vpop.permute.xlu1 %685  ;;  %v341_v43 = vmul.f32 %v899_v30, %v1271_v8  ;;  %v340_v42 = vmul.f32 %v898_v28, %v1271_v8 }
  0x92   :  { %v355_v29 = vadd.f32 %v342_v48, %v264_v60  ;;  %v356_v55 = vadd.f32 %v343_v61, %v265_v3  ;;  %v681_v50 = vpop.permute.xlu0 %680  ;;  %v744_v47 = vmul.f32 %v686_v32, %v1467_v33  ;;  %v509_v60 = vmul.f32 %v977_v62, %v1497_v17 }
  0x93   :  { %v353_v26 = vadd.f32 %v340_v42, %v262_v37  ;;  %v354_v1 = vadd.f32 %v341_v43, %v263_v46  ;;  %v743_v31 = vmul.f32 %v681_v50, %v1477_v11  ;;  %v267_v61 = vmul.f32 %v879_v2, %v1266_v7 }
  0x94   :  { %v394_v0 = vmul.f32 %v1259_v6, %v355_v29  ;;  %v1623_v56 = vmul.f32 %v1273_v10, %v356_v55  ;;  %v1635_v6 = vmul.f32 %v647_v19, %v647_v19  ;;  %v1637_v10 = vsub.f32 %v507_v27, %v624_v57 }
  0x95   :  { %v691_v3 = vpop.permute.xlu1 %690  ;;  %v392_v52 = vmul.f32 %v1275_v14, %v353_v26  ;;  %v393_v12 = vmul.f32 %v1277_v16, %v354_v1  ;;  %v878_v33 = vunpack.i.l.bf16 %v1500_v21  ;;  %v884_v19 = vunpack.i.h.bf16 %v1530_v35  ;;  %v981_v14 = vpop.eup %980 }
  0x96   :  { %v745_v38 = vmul.f32 %v691_v3, %v1479_v59  ;;  %v883_v48 = vunpack.i.l.bf16 %v1530_v35  ;;  %v907_v30 = vpop.permute.xlu0 %906 }
  0x97   :  { %v759_v16 = vsel %vm1630_vm13, %v744_v47, %v393_v12  ;;  %v758_v11 = vsel %vm1630_vm13, %v743_v31, %v392_v52  ;;  %v909_v21 = vunpack.i.h.bf16 %v907_v30  ;;  %v908_v46 = vunpack.i.l.bf16 %v907_v30 }
  0x98   :  { %v760_v59 = vsel %vm1630_vm13, %v745_v38, %v394_v0  ;;  %v774_v35 = vsel %vm1780_vm2, %v759_v16, 0.0  ;;  %v773_v28 = vsel %vm1781_vm3, %v758_v11, 0.0  ;;  %v266_v55 = vmul.f32 %v878_v33, %v1266_v7 }
  0x99   :  { %v776_v62 = vsel %vm1782_vm6, %v760_v59, 0.0  ;;  %v912_v37 = vpop.permute.xlu1 %911  ;;  %v775_v32 = vadd.f32 %v774_v35, %v773_v28  ;;  %v345_v27 = vmul.f32 %v909_v21, %v1271_v8  ;;  %v269_v43 = vmul.f32 %v884_v19, %v1266_v7 }
  0x9a   :  { %v914_v57 = vunpack.i.h.bf16 %v912_v37  ;;  %v913_v29 = vunpack.i.l.bf16 %v912_v37  ;;  %v268_v42 = vmul.f32 %v883_v48, %v1266_v7  ;;  %v344_v2 = vmul.f32 %v908_v46, %v1271_v8  ;;  %v696_v50 = vpop.permute.xlu0 %695 }
  0x9b   :  { %v777_v0 = vadd.f32 %v776_v62, %v775_v32  ;;  %v358_v26 = vadd.f32 %v345_v27, %v267_v61  ;;  %v746_v52 = vmul.f32 %v696_v50, %v1485_v13  ;;  %v516_v31 = vmul.f32 %v981_v14, %v1552_v44 }
  0x9c   :  { %v347_v1 = vmul.f32 %v914_v57, %v1271_v8  ;;  %v346_v47 = vmul.f32 %v913_v29, %v1271_v8  ;;  %v357_v3 = vadd.f32 %v344_v2, %v266_v55  ;;  %v626_v38 = vmul.f32 %v979_v5, %v1250_v63 }
  0x9d   :  { %v706_v12 = vpop.permute.xlu1 %705  ;;  %v397_v33 = vmul.f32 %v1321_v54, %v358_v26  ;;  %v889_v30 = vunpack.i.h.bf16 %v1580_v9  ;;  %v761_v13 = vsel %vm1630_vm13, %v746_v52, %v1623_v56  ;;  %v511_v5 = vsel %vm510_vm11, %v1497_v17, %v509_v60  ;;  %vm1789_vm11 = vmmov %vm1780_vm2 }
  0x9e   :  { %v360_v19 = vadd.f32 %v347_v1, %v269_v43  ;;  %v359_v48 = vadd.f32 %v346_v47, %v268_v42  ;;  %v748_v61 = vmul.f32 %v706_v12, %v1493_v39  ;;  %v396_v16 = vmul.f32 %v1311_v49, %v357_v3  ;;  %v701_v11 = vpop.permute.xlu0 %700 }
  0x9f   :  { %v778_v39 = vsel %vm1783_vm7, %v761_v13, 0.0  ;;  %v888_v49 = vunpack.i.l.bf16 %v1580_v9  ;;  %v747_v56 = vmul.f32 %v701_v11, %v1502_v53  ;;  %v518_v60 = vsel %vm517_vm15, %v1552_v44, %v516_v31  ;;  %vm1793_vm15 = vmmov %vm1780_vm2 }
  0xa0   :  { %v399_v54 = vmul.f32 %v1475_v20, %v360_v19  ;;  %v398_v14 = vmul.f32 %v1471_v18, %v359_v48  ;;  %v763_v59 = vsel %vm1630_vm13, %v748_v61, %v397_v33  ;;  %v779_v21 = vadd.f32 %v778_v39, %v777_v0 }
  0xa1   :  { %v711_v35 = vpop.permute.xlu1 %710  ;;  %v635_v20 = vsel %vm634_vm14, %v1257_v15, %v1619_v23  ;;  %v1784_v28 = vand.u32 2147483648, %v1497_v17  ;;  %v628_v53 = vsel %vm627_vm1, %v1250_v63, %v626_v38  ;;  %v894_v62 = vunpack.i.h.bf16 %v1558_v41  ;;  %vm1792_vm14 = vmmov %vm1780_vm2 }
  0xa2   :  { %v749_v18 = vmul.f32 %v711_v35, %v1532_v24  ;;  %v893_v46 = vunpack.i.l.bf16 %v1558_v41  ;;  %v271_v23 = vmul.f32 %v889_v30, %v1266_v7  ;;  %v762_v24 = vsel %vm1630_vm13, %v747_v56, %v396_v16  ;;  %v917_v37 = vpop.permute.xlu0 %916  ;;  %v1790_v35 = vld [vmem:[#allocation5_spill] sm:$0xff] }
  0xa3   :  { %v514_v9 = vsel %vm512_vm0, %v1784_v28, %v511_v5  ;;  %v780_v32 = vsel %vm1785_vm9, %v762_v24, 0.0  ;;  %v919_v27 = vunpack.i.h.bf16 %v917_v37  ;;  %v918_v57 = vunpack.i.l.bf16 %v917_v37  ;;  %vm1794_vm0 = vmmov %vm1780_vm2 }
  0xa4   :  { %v764_v17 = vsel %vm1630_vm13, %v749_v18, %v398_v14  ;;  %v270_v29 = vmul.f32 %v888_v49, %v1266_v7  ;;  %v782_v55 = vsel %vm1786_vm10, %v763_v59, 0.0  ;;  %v781_v43 = vadd.f32 %v780_v32, %v779_v21  ;;  %vm1795_vm2 = vmmov %vm1794_vm0 }
  0xa5   :  { %v784_v41 = vsel %vm1787_vm12, %v764_v17, 0.0  ;;  %v922_v42 = vpop.permute.xlu1 %921  ;;  %v349_v2 = vmul.f32 %v919_v27, %v1271_v8  ;;  %v348_v50 = vmul.f32 %v918_v57, %v1271_v8  ;;  %v273_v1 = vmul.f32 %v894_v62, %v1266_v7 }
  0xa6   :  { %v924_v0 = vunpack.i.h.bf16 %v922_v42  ;;  %v923_v26 = vunpack.i.l.bf16 %v922_v42  ;;  %v272_v47 = vmul.f32 %v893_v46, %v1266_v7  ;;  %v783_v3 = vadd.f32 %v782_v55, %v781_v43  ;;  %v716_v52 = vpop.permute.xlu0 %715 }
  0xa7   :  { %v631_v12 = vsel %vm629_vm4, %v630_v40, %v628_v53  ;;  %v362_v31 = vadd.f32 %v349_v2, %v271_v23  ;;  %v361_v38 = vadd.f32 %v348_v50, %v270_v29  ;;  %v750_v61 = vmul.f32 %v716_v52, %v1614_v45 }
  0xa8   :  { %v351_v33 = vmul.f32 %v924_v0, %v1271_v8  ;;  %v350_v19 = vmul.f32 %v923_v26, %v1271_v8  ;;  %v785_v48 = vadd.f32 %v784_v41, %v783_v3  ;;  %v675_v16 = vmul.f32 %v1637_v10, %v1637_v10 }
  0xa9   :  { %v726_v30 = vpop.permute.xlu1 %725  ;;  %v1788_v13 = vand.u32 2147483648, %v1257_v15  ;;  %v401_v63 = vmul.f32 %v1483_v34, %v362_v31  ;;  %v400_v40 = vmul.f32 %v1481_v4, %v361_v38  ;;  %v765_v39 = vsel %vm1630_vm13, %v750_v61, %v399_v54  ;;  %v771_v38 = vld [vmem:[#allocation2] sm:$0x1] }
  0xaa   :  { %v364_v5 = vadd.f32 %v351_v33, %v273_v1  ;;  %v363_v14 = vadd.f32 %v350_v19, %v272_v47  ;;  %v752_v45 = vmul.f32 %v726_v30, %v1616_v58  ;;  %v721_v59 = vpop.permute.xlu0 %720  ;;  %v521_v10 = vsel %vm519_vm8, %v520_v36, %v518_v60 }
  0xab   :  { %v638_v11 = vsel %vm636_vm5, %v1788_v13, %v635_v20  ;;  %v650_v49 = vsub.f32 %v514_v9, %v631_v12  ;;  %v786_v4 = vsel %vm1789_vm11, %v765_v39, 0.0  ;;  %v751_v21 = vmul.f32 %v721_v59, %v1635_v6  ;;  %v1791_v20 = vld [vmem:[#allocation6_spill] sm:$0xff] }
  0xac   :  { %v403_v15 = vmul.f32 %v1495_v22, %v364_v5  ;;  %v402_v34 = vmul.f32 %v1491_v51, %v363_v14  ;;  %v787_v56 = vadd.f32 %v786_v4, %v785_v48  ;;  %v767_v54 = vsel %vm1630_vm13, %v752_v45, %v401_v63 }
  0xad   :  { %v731_v58 = vpop.permute.xlu1 %730  ;;  %v378_v18 = vsub.f32 %v1791_v20, %v1790_v35  ;;  %v766_v44 = vsel %vm1630_vm13, %v751_v21, %v400_v40  ;;  %v651_v60 = vsub.f32 %v521_v10, %v638_v11  ;;  %v676_v28 = vmul.f32 %v650_v49, %v650_v49 }
  0xae   :  { %v753_v36 = vmul.f32 %v731_v58, %v675_v16  ;;  %v788_v22 = vsel %vm1792_vm14, %v766_v44, 0.0  ;;  %v927_v51 = vpop.permute.xlu0 %926  ;;  %v790_v46 = vsel %vm1793_vm15, %v767_v54, 0.0  ;;  %vm796_vm1 = vcmask 238592  }
  0xaf   :  { %v789_v9 = vadd.f32 %v788_v22, %v787_v56  ;;  %v929_v53 = vunpack.i.h.bf16 %v927_v51  ;;  %v928_v62 = vunpack.i.l.bf16 %v927_v51  ;;  %v391_v24 = vmul.f32 %v378_v18, %v378_v18 }
  0xb0   :  { %v768_v6 = vsel %vm1630_vm13, %v753_v36, %v402_v34  ;;  %v677_v27 = vmul.f32 %v651_v60, %v651_v60  ;;  %vm806_vm3 = vcmask 237568  }
  0xb1   :  { %v792_v23 = vsel %vm1794_vm0, %v768_v6, 0.0  ;;  %v791_v37 = vadd.f32 %v790_v46, %v789_v9  ;;  %v352_v32 = vmul.f32 %v929_v53, %v1271_v8  ;;  %v274_v17 = vmul.f32 %v928_v62, %v1266_v7  ;;  %v741_v57 = vpop.permute.xlu1 %740 }
  0xb2   :  { %v736_v29 = vpop.permute.xlu0 %735  ;;  %v755_v2 = vmul.f32 %v741_v57, %v677_v27 }
  0xb3   :  { %v793_v55 = vadd.f32 %v792_v23, %v791_v37  ;;  %v365_v43 = vadd.f32 %v352_v32, %v274_v17  ;;  %v754_v41 = vmul.f32 %v736_v29, %v676_v28 }
  0xb5   :  { %v404_v42 = vmul.f32 %v391_v24, %v365_v43  ;;  %v769_v50 = vsel %vm1630_vm13, %v754_v41, %v403_v15 }
  0xb6   :  { %v794_v0 = vsel %vm1795_vm2, %v769_v50, 0.0 }
  0xb7   :  { %v770_v26 = vsel %vm1630_vm13, %v755_v2, %v404_v42  ;;  %v795_v8 = vadd.f32 %v794_v0, %v793_v55 }
  0xb8   :  { %v797_v1 = vsel %vm796_vm1, %v770_v26, 0.0 }
  0xb9   :  { %v798_v7 = vadd.f32 %v797_v1, %v795_v8 }
  0xbb   :  { %v799_v47 = vrot.slane %v798_v7, 4 }
  0xbd   :  { %v800_v3 = vadd.f32 %v799_v47, %v798_v7 }
  0xbf   :  { %v801_v52 = vrot.slane %v800_v3, 2 }
  0xc1   :  { %v802_v12 = vadd.f32 %v801_v52, %v800_v3 }
  0xc3   :  { %v803_v31 = vrot.slane %v802_v12, 1 }
  0xc5   :  { %v804_v33 = vadd.f32 %v803_v31, %v802_v12 }
  0xc7   :  { %v805_v19 = vadd.f32 %v804_v33, %v771_v38 }
  0xc9   :  { %807 = vst.msk [vmem:[#allocation2] sm:$0x1] %vm806_vm3, %v805_v19 }
  0xca   :  { %993 = shalt.err (!%p990_p4)
}
  0xcb   :  { %817 = dma.vmem_to_hbm [thread:$0]  %s815_s4, 128, %s1770_s2, [#allocation3]  }
  0xcc   :  { %1002 = dma.done.wait [#allocation3], 128  }
  0xcd   :  { %1003 = vsyncadd [#allocation3], 4294967168 }
  0xce   :  { %821 = vsyncpa [#allocation3], 1 }

</bundles_post_ra>
